<compile_context>
chip_gen: v5e
topology: v5e:2x2
jax: 0.10.0
libtpu: 0.0.40
codegen_flags: <defaults>
</compile_context>

<pallas_src>
import jax
import jax.numpy as jnp
from jax.experimental import pallas as pl
from jax.experimental.pallas import tpu as pltpu

STUDENT_TEMP = 0.1
TEACHER_TEMP = 0.04
INV_STUDENT_TEMP = 1.0 / STUDENT_TEMP
INV_TEACHER_TEMP = 1.0 / TEACHER_TEMP
CENTER_MOMENTUM = 0.9  # only used by update_center (not part of forward)
# TODO(synk): update_center (EMA of teacher batch mean) is training-state
# bookkeeping outside the forward pass; do it in plain JAX, no kernel needed.


def _dino_loss_kernel(student_ref, teacher_ref, center_ref, out_ref):
    # (tile_b, D) f32 working set; inputs may be bf16 in HBM.
    s = student_ref[...].astype(jnp.float32) * INV_STUDENT_TEMP
    t = (teacher_ref[...].astype(jnp.float32)
         - center_ref[...].astype(jnp.float32)) * INV_TEACHER_TEMP

    # log_softmax(student) along the lane axis.
    s_max = jnp.max(s, axis=-1, keepdims=True)
    s_shift = s - s_max
    s_lse = jnp.log(jnp.sum(jnp.exp(s_shift), axis=-1, keepdims=True))
    s_logsoft = s_shift - s_lse                                       # (TB, D)

    # softmax(teacher) along the lane axis.
    t_max = jnp.max(t, axis=-1, keepdims=True)
    t_exp = jnp.exp(t - t_max)
    denom = jnp.sum(t_exp, axis=-1, keepdims=True)                    # (TB, 1)
    r = pl.reciprocal(denom, approx=True)    # EUP vrcp (free slot)
    r = r * (2.0 - denom * r)                # one Newton step -> full f32 prec
    t_soft = t_exp * r                                                # (TB, D)

    # Per-row cross entropy. No cross-step accumulation: each grid step owns
    # its own (tile_b, 1) output rows, so the grid axis can be "parallel".
    out_ref[...] = jnp.sum(-t_soft * s_logsoft, axis=-1, keepdims=True)


def _pick_tile_b(B, D, in_itemsize, vmem_budget_bytes):
    """Largest batch tile (multiple of 8, dividing B) within the VMEM budget."""
    # Per batch row resident in VMEM:
    #   student + teacher blocks, double-buffered: 2 inputs * 2 bufs * D * isz
    #   ~6 live f32 temporaries of width D in the body (s, t, shift, exp, ...)
    bytes_per_row = D * (2 * 2 * in_itemsize + 6 * 4)
    max_rows = max(8, int(vmem_budget_bytes // max(bytes_per_row, 1)))
    max_rows = min(max_rows, 1024)  # per-step overhead fully amortized by here
    if B <= max_rows:
        return B                    # single tile (block == full array is legal)
    tile = (max_rows // 8) * 8
    while tile > 8 and B % tile != 0:
        tile -= 8
    if B % tile != 0:
        tile = B                    # odd batch sizes: fall back to one tile
    return tile


def dino_loss(student_output, teacher_output, center, *,
              tile_b=None, vmem_budget_bytes=24 * 1024 * 1024):
    B, D = student_output.shape
    assert teacher_output.shape == (B, D)
    assert center.shape == (1, D)

    if tile_b is None:
        tile_b = _pick_tile_b(B, D, student_output.dtype.itemsize,
                              vmem_budget_bytes)
    assert B % tile_b == 0, (B, tile_b)

    grid = (B // tile_b,)

    per_row = pl.pallas_call(
        _dino_loss_kernel,
        out_shape=jax.ShapeDtypeStruct((B, 1), jnp.float32),
        grid_spec=pltpu.PrefetchScalarGridSpec(
            num_scalar_prefetch=0,
            grid=grid,
            in_specs=[
                pl.BlockSpec((tile_b, D), lambda i: (i, 0)),   # student
                pl.BlockSpec((tile_b, D), lambda i: (i, 0)),   # teacher
                pl.BlockSpec((1, D), lambda i: (0, 0)),        # center
            ],
            out_specs=pl.BlockSpec((tile_b, 1), lambda i: (i, 0)),
        ),
        compiler_params=pltpu.CompilerParams(
            dimension_semantics=("parallel",),       # independent tiles
            vmem_limit_bytes=48 * 1024 * 1024,       # allow the large tile
        ),
    )(student_output, teacher_output, center)

    return jnp.mean(per_row)  # mean over batch rows


def dino_loss_reference(student_output, teacher_output, center):
    s = student_output.astype(jnp.float32) / STUDENT_TEMP
    t = (teacher_output.astype(jnp.float32) - center) / TEACHER_TEMP
    t_soft = jax.nn.softmax(t, axis=-1)
    s_logsoft = jax.nn.log_softmax(s, axis=-1)
    return jnp.mean(jnp.sum(-t_soft * s_logsoft, axis=-1))


if __name__ == "__main__":
    key = jax.random.PRNGKey(0)
    k1, k2, k3 = jax.random.split(key, 3)

    B, D = 64, 128
    student = jax.random.normal(k1, (B, D), dtype=jnp.float32)
    teacher = jax.random.normal(k2, (B, D), dtype=jnp.float32)
    center = 0.1 * jax.random.normal(k3, (1, D), dtype=jnp.float32)

    out = dino_loss(student, teacher, center)
    out = jax.block_until_ready(out)

    ref = dino_loss_reference(student, teacher, center)
    assert jnp.allclose(out, ref, rtol=1e-5, atol=1e-5), (out, ref)

    print("KERNEL_OK")
</pallas_src>

<mosaic_0001>
module attributes {stable_mosaic.version = 11 : i64} {
  func.func @_dino_loss_kernel(%arg0: i32, %arg1: memref<64x128xf32, #tpu.memory_space<vmem>>, %arg2: memref<64x128xf32, #tpu.memory_space<vmem>>, %arg3: memref<1x128xf32, #tpu.memory_space<vmem>>, %arg4: memref<64x1xf32, #tpu.memory_space<vmem>>) attributes {dimension_semantics = [#tpu.dimension_semantics<parallel>], iteration_bounds = array<i64: 1>, scalar_prefetch = 0 : i64, scratch_operands = 0 : i64, tpu.core_type = #tpu.core_type<tc>, window_params = [{transform_indices = @transform_0, window_bounds = array<i64: 64, 128>}, {transform_indices = @transform_1, window_bounds = array<i64: 64, 128>}, {pipeline_mode = #tpu.pipeline_mode<synchronous>, transform_indices = @transform_2, window_bounds = array<i64: 1, 128>}, {transform_indices = @transform_3, window_bounds = array<i64: 64, 1>}]} {
    %c0 = arith.constant 0 : index
    %c0_0 = arith.constant 0 : index
    %0 = vector.load %arg1[%c0, %c0_0] : memref<64x128xf32, #tpu.memory_space<vmem>>, vector<64x128xf32>
    %cst = arith.constant 1.000000e+01 : f32
    %1 = vector.broadcast %cst : f32 to vector<64x128xf32>
    %2 = arith.mulf %0, %1 : vector<64x128xf32>
    %c0_1 = arith.constant 0 : index
    %c0_2 = arith.constant 0 : index
    %3 = vector.load %arg2[%c0_1, %c0_2] : memref<64x128xf32, #tpu.memory_space<vmem>>, vector<64x128xf32>
    %c0_3 = arith.constant 0 : index
    %c0_4 = arith.constant 0 : index
    %4 = vector.load %arg3[%c0_3, %c0_4] : memref<1x128xf32, #tpu.memory_space<vmem>>, vector<1x128xf32>
    %5 = vector.broadcast %4 : vector<1x128xf32> to vector<64x128xf32>
    %6 = arith.subf %3, %5 : vector<64x128xf32>
    %cst_5 = arith.constant 2.500000e+01 : f32
    %7 = vector.broadcast %cst_5 : f32 to vector<64x128xf32>
    %8 = arith.mulf %6, %7 : vector<64x128xf32>
    %cst_6 = arith.constant dense<0xFF800000> : vector<64xf32>
    %9 = vector.multi_reduction <maximumf>, %2, %cst_6 [1] : vector<64x128xf32> to vector<64xf32>
    %10 = vector.shape_cast %9 : vector<64xf32> to vector<64x1xf32>
    %11 = vector.broadcast %10 : vector<64x1xf32> to vector<64x128xf32>
    %12 = arith.subf %2, %11 : vector<64x128xf32>
    %13 = math.exp %12 : vector<64x128xf32>
    %cst_7 = arith.constant dense<0.000000e+00> : vector<64xf32>
    %14 = vector.multi_reduction <add>, %13, %cst_7 [1] : vector<64x128xf32> to vector<64xf32>
    %15 = vector.shape_cast %14 : vector<64xf32> to vector<64x1xf32>
    %16 = math.log %15 : vector<64x1xf32>
    %17 = vector.broadcast %16 : vector<64x1xf32> to vector<64x128xf32>
    %18 = arith.subf %12, %17 : vector<64x128xf32>
    %cst_8 = arith.constant dense<0xFF800000> : vector<64xf32>
    %19 = vector.multi_reduction <maximumf>, %8, %cst_8 [1] : vector<64x128xf32> to vector<64xf32>
    %20 = vector.shape_cast %19 : vector<64xf32> to vector<64x1xf32>
    %21 = vector.broadcast %20 : vector<64x1xf32> to vector<64x128xf32>
    %22 = arith.subf %8, %21 : vector<64x128xf32>
    %23 = math.exp %22 : vector<64x128xf32>
    %cst_9 = arith.constant dense<0.000000e+00> : vector<64xf32>
    %24 = vector.multi_reduction <add>, %23, %cst_9 [1] : vector<64x128xf32> to vector<64xf32>
    %25 = vector.shape_cast %24 : vector<64xf32> to vector<64x1xf32>
    %26 = tpu.reciprocal %25 {approx = true} : vector<64x1xf32> -> vector<64x1xf32>
    %27 = arith.mulf %25, %26 : vector<64x1xf32>
    %cst_10 = arith.constant 2.000000e+00 : f32
    %28 = vector.broadcast %cst_10 : f32 to vector<64x1xf32>
    %29 = arith.subf %28, %27 : vector<64x1xf32>
    %30 = arith.mulf %26, %29 : vector<64x1xf32>
    %31 = vector.broadcast %30 : vector<64x1xf32> to vector<64x128xf32>
    %32 = arith.mulf %23, %31 : vector<64x128xf32>
    %cst_11 = arith.constant 0.000000e+00 : f32
    %33 = vector.broadcast %cst_11 : f32 to vector<64x128xf32>
    %34 = arith.subf %33, %32 : vector<64x128xf32>
    %35 = arith.mulf %34, %18 : vector<64x128xf32>
    %cst_12 = arith.constant dense<0.000000e+00> : vector<64xf32>
    %36 = vector.multi_reduction <add>, %35, %cst_12 [1] : vector<64x128xf32> to vector<64xf32>
    %37 = vector.shape_cast %36 : vector<64xf32> to vector<64x1xf32>
    %c0_13 = arith.constant 0 : index
    %c0_14 = arith.constant 0 : index
    %38 = vector.load %arg4[%c0_13, %c0_14] : memref<64x1xf32, #tpu.memory_space<vmem>>, vector<64x1xf32>
    tpu.vector_store %arg4[%c0_13, %c0_14], %37 {strides = array<i32>} : memref<64x1xf32, #tpu.memory_space<vmem>>, vector<64x1xf32>,
    return
  }
  func.func @transform_0(%arg0: i32) -> (i32, i32) {
    %c0_i32 = arith.constant 0 : i32
    %c0_i32_0 = arith.constant 0 : i32
    return %arg0, %c0_i32 : i32, i32
  }
  func.func @transform_1(%arg0: i32) -> (i32, i32) {
    %c0_i32 = arith.constant 0 : i32
    %c0_i32_0 = arith.constant 0 : i32
    return %arg0, %c0_i32 : i32, i32
  }
  func.func @transform_2(%arg0: i32) -> (i32, i32) {
    %c0_i32 = arith.constant 0 : i32
    %c0_i32_0 = arith.constant 0 : i32
    %c0_i32_1 = arith.constant 0 : i32
    return %c0_i32, %c0_i32_0 : i32, i32
  }
  func.func @transform_3(%arg0: i32) -> (i32, i32) {
    %c0_i32 = arith.constant 0 : i32
    %c0_i32_0 = arith.constant 0 : i32
    return %arg0, %c0_i32 : i32, i32
  }
}

</mosaic_0001>

<bundles_post_ra>
// kernel: tpu_custom_call.1
= control target key start
LH: loop header
LB: loop body
LE: loop exit
PB: predicated region body
PF: predicated region fallthrough
CT: control target
= control target key end

     0   :  { %8 = vsyncpa [#allocation3], 0  ;;  %s610_s0 = inlined_call_operand.hbm [shape: f32[64,128], index: 0, kind: input, shape index: {}]   ;;  %s611_s1 = inlined_call_operand.hbm [shape: f32[64,128], index: 1, kind: input, shape index: {}]   ;;  %s612_s2 = inlined_call_operand.vmem [shape: f32[1,128], index: 2, kind: input, shape index: {}]   ;;  %s613_s3 = inlined_call_operand.vmem [shape: f32[64,1], index: 3, kind: output, shape index: {}]  }
   0x1   :  { %s14_s14 = sshll.u32 %s610_s0, 4  ;;  %s15_s14 = int_to_ptr.hbm [resolvable:$true] %s14_s14 }
   0x2   :  { %9 = vsyncpa [#allocation5], 0  ;;  %s434_s15 = smov [#allocation2]   ;;  %s27_s19 = sshll.u32 %s611_s1, 4  ;;  %s28_s19 = int_to_ptr.hbm [resolvable:$true] %s27_s19 }
   0x3   :  { %s16_s16 = sshll.u32 %s434_s15, 4  ;;  %s435_s20 = smov 128   ;;  %s17_s16 = int_to_ptr.vmem [resolvable:$true] %s16_s16 }
   0x4   :  { %s436_s21 = smov 8   ;;  %s437_s22 = smov [#allocation4]  }
   0x5   :  { %22 = dma.hbm_to_vmem [thread:$0]  %s15_s14, 1024, %s17_s16, [#allocation3], %s435_s20, %s435_s20, %s436_s21  }
   0x6   :  { %s29_s23 = sshll.u32 %s437_s22, 4  ;;  %s30_s23 = int_to_ptr.vmem [resolvable:$true] %s29_s23 }
   0x7   :  { %35 = dma.hbm_to_vmem [thread:$0]  %s28_s19, 1024, %s30_s23, [#allocation5], %s435_s20, %s435_s20, %s436_s21  }
   0x8   :  { %430 = dma.done.wait [#allocation3], 1024  }
   0x9   :  { %431 = vsyncadd [#allocation3], 4294966272 }
   0xa   :  { %432 = dma.done.wait [#allocation5], 1024  }
   0xb   :  { %433 = vsyncadd [#allocation5], 4294966272  ;;  %v66_v0 = vld [vmem:[#allocation4 + $0x20] sm:$0xff]  ;;  %v64_v2 = vld [vmem:[#allocation4 + $0x10] sm:$0xff]  ;;  %vm298_vm0 = vcmask 7168  }
   0xc   :  { %v317_v1 = vld [vmem:[%s612_s2] ss:$0 sm:$0xff]  ;;  %v67_v7 = vld [vmem:[#allocation4 + $0x28] sm:$0xff]  ;;  %v65_v8 = vld [vmem:[#allocation4 + $0x18] sm:$0xff] }
   0xd   :  { %v62_v3 = vld [vmem:[#allocation4] sm:$0xff]  ;;  %v78_v4 = vsub.f32 %v66_v0, %v317_v1  ;;  %v76_v5 = vsub.f32 %v64_v2, %v317_v1  ;;  %v63_v12 = vld [vmem:[#allocation4 + $0x8] sm:$0xff]  ;;  %v79_v13 = vsub.f32 %v67_v7, %v317_v1  ;;  %v77_v14 = vsub.f32 %v65_v8, %v317_v1  ;;  %v69_v19 = vld [vmem:[#allocation4 + $0x38] sm:$0xff] }
   0xe   :  { %v74_v6 = vsub.f32 %v62_v3, %v317_v1  ;;  %v75_v15 = vsub.f32 %v63_v12, %v317_v1  ;;  %v68_v20 = vld [vmem:[#allocation4 + $0x30] sm:$0xff]  ;;  %v81_v21 = vsub.f32 %v69_v19, %v317_v1  ;;  %v46_v23 = vld [vmem:[#allocation2] sm:$0xff]  ;;  %v49_v28 = vld [vmem:[#allocation2 + $0x18] sm:$0xff] }
   0xf   :  { %v467_v9 = vmul.f32 25.0, %v78_v4  ;;  %v469_v10 = vmul.f32 25.0, %v76_v5  ;;  %v476_v16 = vmul.f32 25.0, %v79_v13  ;;  %v478_v17 = vmul.f32 25.0, %v77_v14  ;;  %v48_v27 = vld [vmem:[#allocation2 + $0x10] sm:$0xff]  ;;  %v47_v29 = vld [vmem:[#allocation2 + $0x8] sm:$0xff] }
  0x10   :  { %v471_v11 = vmul.f32 25.0, %v74_v6  ;;  %v480_v18 = vmul.f32 25.0, %v75_v15  ;;  %v80_v22 = vsub.f32 %v68_v20, %v317_v1  ;;  %v485_v24 = vmul.f32 25.0, %v81_v21  ;;  %v52_v33 = vld [vmem:[#allocation2 + $0x30] sm:$0xff]  ;;  %v51_v34 = vld [vmem:[#allocation2 + $0x28] sm:$0xff]  ;;  %v50_v35 = vld [vmem:[#allocation2 + $0x20] sm:$0xff] }
  0x11   :  { %178 = vmax.xlane.f32.xlu2 %v467_v9  ;;  %174 = vmax.xlane.f32.xlu1 %v469_v10  ;;  %v54_v25 = vmul.f32 10.0, %v46_v23  ;;  %v56_v30 = vmul.f32 10.0, %v48_v27  ;;  %v57_v31 = vmul.f32 10.0, %v49_v28  ;;  %v55_v32 = vmul.f32 10.0, %v47_v29  ;;  %v53_v39 = vld [vmem:[#allocation2 + $0x38] sm:$0xff] }
  0x12   :  { %170 = vmax.xlane.f32.xlu0 %v471_v11  ;;  %v487_v26 = vmul.f32 25.0, %v80_v22  ;;  %v491_v36 = vmul.f32 10.0, %v52_v33  ;;  %v493_v37 = vmul.f32 10.0, %v51_v34  ;;  %v58_v38 = vmul.f32 10.0, %v50_v35 }
  0x13   :  { %v497_v40 = vmul.f32 10.0, %v53_v39 }
  0x19   :  { %180 = vmax.xlane.f32.xlu2 %v476_v16  ;;  %176 = vmax.xlane.f32.xlu1 %v478_v17 }
  0x1a   :  { %172 = vmax.xlane.f32.xlu0 %v480_v18 }
  0x21   :  { %184 = vmax.xlane.f32.xlu1 %v485_v24  ;;  %90 = vmax.xlane.f32.xlu2 %v54_v25 }
  0x22   :  { %182 = vmax.xlane.f32.xlu0 %v487_v26 }
  0x29   :  { %94 = vmax.xlane.f32.xlu1 %v56_v30  ;;  %96 = vmax.xlane.f32.xlu2 %v57_v31 }
  0x2a   :  { %92 = vmax.xlane.f32.xlu0 %v55_v32 }
  0x31   :  { %102 = vmax.xlane.f32.xlu2 %v491_v36  ;;  %100 = vmax.xlane.f32.xlu1 %v493_v37 }
  0x32   :  { %98 = vmax.xlane.f32.xlu0 %v58_v38 }
  0x3a   :  { %104 = vmax.xlane.f32.xlu0 %v497_v40 }
  0x84   :  { %v179_v41 = vpop.xlane.xlu2 %178  ;;  %v175_v42 = vpop.xlane.xlu1 %174 }
  0x85   :  { %v171_v43 = vpop.xlane.xlu0 %170  ;;  %v188_v63 = vsub.f32 %v469_v10, %v175_v42  ;;  %v190_v8 = vsub.f32 %v467_v9, %v179_v41 }
  0x86   :  { %v186_v12 = vsub.f32 %v471_v11, %v171_v43 }
  0x87   :  { %v198_v4 = vmul.f32 1.442695, %v188_v63  ;;  %v202_v13 = vmul.f32 1.442695, %v190_v8 }
  0x88   :  { %v194_v14 = vmul.f32 1.442695, %v186_v12 }
  0x8c   :  { %v181_v44 = vpop.xlane.xlu2 %180  ;;  %v177_v45 = vpop.xlane.xlu1 %176 }
  0x8d   :  { %v173_v46 = vpop.xlane.xlu0 %172  ;;  %v191_v10 = vsub.f32 %v476_v16, %v181_v44  ;;  %v189_v16 = vsub.f32 %v478_v17, %v177_v45 }
  0x8e   :  { %v187_v62 = vsub.f32 %v480_v18, %v173_v46 }
  0x8f   :  { %v204_v19 = vmul.f32 1.442695, %v191_v10 }
  0x90   :  { %v196_v0 = vmul.f32 1.442695, %v187_v62 }
  0x94   :  { %v185_v47 = vpop.xlane.xlu1 %184  ;;  %v91_v48 = vpop.xlane.xlu2 %90 }
  0x95   :  { %v500_v49 = vpop.xlane.xlu0 %182  ;;  %v502_v50 = vsub.f32 %v54_v25, %v91_v48  ;;  %v193_v21 = vsub.f32 %v485_v24, %v185_v47  ;;  %v200_v24 = vmul.f32 1.442695, %v189_v16 }
  0x96   :  { %v192_v17 = vsub.f32 %v487_v26, %v500_v49 }
  0x97   :  { %v114_v51 = vmul.f32 1.442695, %v502_v50  ;;  %v208_v22 = vmul.f32 1.442695, %v193_v21 }
  0x98   :  { %v206_v34 = vmul.f32 1.442695, %v192_v17 }
  0x99   :  { %318 = vpow2.f32 %v114_v51 }
  0x9c   :  { %v95_v52 = vpop.xlane.xlu1 %94  ;;  %v97_v53 = vpop.xlane.xlu2 %96 }
  0x9d   :  { %v505_v54 = vsub.f32 %v56_v30, %v95_v52  ;;  %v93_v55 = vpop.xlane.xlu0 %92  ;;  %v507_v56 = vsub.f32 %v57_v31, %v97_v53 }
  0x9e   :  { %v509_v57 = vsub.f32 %v55_v32, %v93_v55 }
  0x9f   :  { %v118_v58 = vmul.f32 1.442695, %v505_v54  ;;  %v120_v59 = vmul.f32 1.442695, %v507_v56  ;;  %v319_v61 = vpop.eup %318 }
  0xa0   :  { %v116_v60 = vmul.f32 1.442695, %v509_v57  ;;  %130 = vadd.xlane.f32.xlu0 %v319_v61 }
  0xa1   :  { %320 = vpow2.f32 %v118_v58 }
  0xa2   :  { %322 = vpow2.f32 %v116_v60 }
  0xa3   :  { %324 = vpow2.f32 %v120_v59 }
  0xa4   :  { %326 = vpow2.f32 %v196_v0  ;;  %v103_v15 = vpop.xlane.xlu2 %102  ;;  %v101_v23 = vpop.xlane.xlu1 %100 }
  0xa5   :  { %v99_v1 = vpop.xlane.xlu0 %98  ;;  %v529_v11 = vsub.f32 %v491_v36, %v103_v15  ;;  %v537_v28 = vsub.f32 %v493_v37, %v101_v23 }
  0xa6   :  { %v516_v2 = vsub.f32 %v58_v38, %v99_v1 }
  0xa7   :  { %v321_v3 = vpop.eup %320  ;;  %v126_v25 = vmul.f32 1.442695, %v529_v11  ;;  %v124_v31 = vmul.f32 1.442695, %v537_v28 }
  0xa8   :  { %v323_v5 = vpop.eup %322  ;;  %v122_v6 = vmul.f32 1.442695, %v516_v2  ;;  %134 = vadd.xlane.f32.xlu2 %v321_v3 }
  0xa9   :  { %v325_v7 = vpop.eup %324  ;;  %132 = vadd.xlane.f32.xlu1 %v323_v5 }
  0xaa   :  { %328 = vpow2.f32 %v122_v6  ;;  %136 = vadd.xlane.f32.xlu0 %v325_v7  ;;  %v522_v18 = vpop.eup %326 }
  0xab   :  { %330 = vpow2.f32 %v198_v4 }
  0xac   :  { %332 = vpow2.f32 %v202_v13 }
  0xad   :  { %334 = vpow2.f32 %v194_v14  ;;  %v105_v32 = vpop.xlane.xlu0 %104 }
  0xae   :  { %336 = vpow2.f32 %v204_v19  ;;  %v555_v37 = vsub.f32 %v497_v40, %v105_v32 }
  0xaf   :  { %338 = vpow2.f32 %v208_v22 }
  0xb0   :  { %v329_v20 = vpop.eup %328  ;;  %212 = vadd.xlane.f32.xlu2 %v522_v18  ;;  %340 = vpow2.f32 %v126_v25  ;;  %v128_v26 = vmul.f32 1.442695, %v555_v37 }
  0xb1   :  { %v526_v9 = vpop.eup %330  ;;  %138 = vadd.xlane.f32.xlu1 %v329_v20  ;;  %342 = vpow2.f32 %v200_v24 }
  0xb2   :  { %214 = vadd.xlane.f32.xlu0 %v526_v9  ;;  %v534_v27 = vpop.eup %332  ;;  %344 = vpow2.f32 %v124_v31 }
  0xb3   :  { %v539_v29 = vpop.eup %334  ;;  %346 = vpow2.f32 %v206_v34 }
  0xb4   :  { %v542_v30 = vpop.eup %336  ;;  %348 = vpow2.f32 %v128_v26 }
  0xb5   :  { %v549_v33 = vpop.eup %338 }
  0xb6   :  { %v341_v35 = vpop.eup %340 }
  0xb7   :  { %v551_v36 = vpop.eup %342 }
  0xb8   :  { %218 = vadd.xlane.f32.xlu2 %v534_v27  ;;  %v345_v38 = vpop.eup %344 }
  0xb9   :  { %210 = vadd.xlane.f32.xlu1 %v539_v29  ;;  %v559_v39 = vpop.eup %346 }
  0xba   :  { %220 = vadd.xlane.f32.xlu0 %v542_v30  ;;  %v349_v41 = vpop.eup %348 }
  0xc0   :  { %224 = vadd.xlane.f32.xlu2 %v549_v33 }
  0xc1   :  { %216 = vadd.xlane.f32.xlu1 %v551_v36 }
  0xc2   :  { %142 = vadd.xlane.f32.xlu0 %v341_v35 }
  0xc8   :  { %140 = vadd.xlane.f32.xlu2 %v345_v38 }
  0xc9   :  { %222 = vadd.xlane.f32.xlu1 %v559_v39 }
  0xd1   :  { %144 = vadd.xlane.f32.xlu1 %v349_v41 }
 0x113   :  { %v131_v42 = vpop.xlane.xlu0 %130 }
 0x11b   :  { %v135_v43 = vpop.xlane.xlu2 %134 }
 0x11c   :  { %v133_v44 = vpop.xlane.xlu1 %132 }
 0x11d   :  { %v137_v40 = vpop.xlane.xlu0 %136 }
 0x123   :  { %v213_v45 = vpop.xlane.xlu2 %212 }
 0x124   :  { %v139_v46 = vpop.xlane.xlu1 %138  ;;  %350 = vrcp.f32 %v213_v45 }
 0x125   :  { %352 = vlog2.f32 %v135_v43  ;;  %v215_v47 = vpop.xlane.xlu0 %214 }
 0x126   :  { %354 = vrcp.f32 %v215_v47 }
 0x127   :  { %356 = vlog2.f32 %v133_v44 }
 0x128   :  { %358 = vlog2.f32 %v139_v46 }
 0x12a   :  { %v351_v48 = vpop.eup %350 }
 0x12b   :  { %v353_v49 = vpop.eup %352  ;;  %v235_v51 = vmul.f32 %v351_v48, %v213_v45  ;;  %v219_v52 = vpop.xlane.xlu2 %218 }
 0x12c   :  { %v355_v53 = vpop.eup %354  ;;  %v211_v55 = vpop.xlane.xlu1 %210  ;;  %360 = vrcp.f32 %v219_v52  ;;  %v151_v1 = vmul.f32 0.6931472, %v353_v49 }
 0x12d   :  { %v357_v58 = vpop.eup %356  ;;  %v236_v59 = vmul.f32 %v355_v53, %v215_v47  ;;  %v243_v60 = vsub.f32 2.0, %v235_v51  ;;  %362 = vrcp.f32 %v211_v55  ;;  %v221_v61 = vpop.xlane.xlu0 %220 }
 0x12e   :  { %364 = vrcp.f32 %v221_v61  ;;  %v149_v0 = vmul.f32 0.6931472, %v357_v58  ;;  %v359_v3 = vpop.eup %358  ;;  %v164_v20 = vsub.f32 %v505_v54, %v151_v1 }
 0x12f   :  { %366 = vlog2.f32 %v131_v42  ;;  %v244_v62 = vsub.f32 2.0, %v236_v59  ;;  %v251_v63 = vmul.f32 %v351_v48, %v243_v60  ;;  %v155_v17 = vmul.f32 0.6931472, %v359_v3 }
 0x130   :  { %v163_v21 = vsub.f32 %v509_v57, %v149_v0 }
 0x131   :  { %v252_v4 = vmul.f32 %v355_v53, %v244_v62  ;;  %v259_v5 = vmul.f32 %v522_v18, %v251_v63  ;;  %v166_v42 = vsub.f32 %v516_v2, %v155_v17 }
 0x132   :  { %v361_v6 = vpop.eup %360 }
 0x133   :  { %v363_v7 = vpop.eup %362  ;;  %v238_v8 = vmul.f32 %v361_v6, %v219_v52  ;;  %v225_v12 = vpop.xlane.xlu2 %224  ;;  %v260_v10 = vmul.f32 %v526_v9, %v252_v4  ;;  %v267_v13 = vsub.f32 0.0, %v259_v5 }
 0x134   :  { %v365_v14 = vpop.eup %364  ;;  %v234_v15 = vmul.f32 %v363_v7, %v211_v55  ;;  %v217_v19 = vpop.xlane.xlu1 %216  ;;  %368 = vrcp.f32 %v225_v12 }
 0x135   :  { %v367_v16 = vpop.eup %366  ;;  %v239_v22 = vmul.f32 %v365_v14, %v221_v61  ;;  %v246_v23 = vsub.f32 2.0, %v238_v8  ;;  %370 = vrcp.f32 %v217_v19  ;;  %v268_v18 = vsub.f32 0.0, %v260_v10 }
 0x136   :  { %v242_v25 = vsub.f32 2.0, %v234_v15  ;;  %v275_v24 = vmul.f32 %v267_v13, %v163_v21  ;;  %372 = vlog2.f32 %v137_v40  ;;  %v147_v32 = vmul.f32 0.6931472, %v367_v16  ;;  %v143_v40 = vpop.xlane.xlu0 %142 }
 0x137   :  { %v254_v31 = vmul.f32 %v361_v6, %v246_v23  ;;  %v276_v9 = vmul.f32 %v268_v18, %v164_v20  ;;  %v247_v35 = vsub.f32 2.0, %v239_v22 }
 0x138   :  { %v250_v34 = vmul.f32 %v363_v7, %v242_v25  ;;  %284 = vadd.xlane.f32.xlu0 %v275_v24  ;;  %v162_v46 = vsub.f32 %v502_v50, %v147_v32 }
 0x139   :  { %286 = vadd.xlane.f32.xlu1 %v276_v9  ;;  %v262_v54 = vmul.f32 %v534_v27, %v254_v31  ;;  %v255_v49 = vmul.f32 %v365_v14, %v247_v35 }
 0x13a   :  { %v369_v26 = vpop.eup %368  ;;  %v258_v57 = vmul.f32 %v539_v29, %v250_v34 }
 0x13b   :  { %v371_v38 = vpop.eup %370  ;;  %v141_v41 = vpop.xlane.xlu2 %140  ;;  %v270_v43 = vsub.f32 0.0, %v262_v54  ;;  %v241_v52 = vmul.f32 %v369_v26, %v225_v12  ;;  %v263_v2 = vmul.f32 %v542_v30, %v255_v49 }
 0x13c   :  { %v237_v44 = vmul.f32 %v371_v38, %v217_v19  ;;  %v223_v45 = vpop.xlane.xlu1 %222  ;;  %374 = vlog2.f32 %v141_v41  ;;  %v266_v47 = vsub.f32 0.0, %v258_v57  ;;  %v373_v48 = vpop.eup %372 }
 0x13d   :  { %376 = vrcp.f32 %v223_v45  ;;  %v278_v51 = vmul.f32 %v270_v43, %v166_v42  ;;  %v153_v29 = vmul.f32 0.6931472, %v373_v48  ;;  %v249_v59 = vsub.f32 2.0, %v241_v52 }
 0x13e   :  { %v245_v27 = vsub.f32 2.0, %v237_v44  ;;  %v274_v53 = vmul.f32 %v266_v47, %v162_v46  ;;  %378 = vlog2.f32 %v143_v40  ;;  %v271_v5 = vsub.f32 0.0, %v263_v2 }
 0x13f   :  { %v165_v0 = vsub.f32 %v507_v56, %v153_v29  ;;  %v257_v6 = vmul.f32 %v369_v26, %v249_v59 }
 0x140   :  { %v253_v55 = vmul.f32 %v371_v38, %v245_v27  ;;  %282 = vadd.xlane.f32.xlu2 %v274_v53  ;;  %290 = vadd.xlane.f32.xlu0 %v278_v51 }
 0x141   :  { %v265_v13 = vmul.f32 %v549_v33, %v257_v6 }
 0x142   :  { %v375_v58 = vpop.eup %374  ;;  %v261_v60 = vmul.f32 %v551_v36, %v253_v55 }
 0x143   :  { %v377_v50 = vpop.eup %376  ;;  %v157_v61 = vmul.f32 0.6931472, %v375_v58  ;;  %v273_v21 = vsub.f32 0.0, %v265_v13 }
 0x144   :  { %v240_v62 = vmul.f32 %v377_v50, %v223_v45  ;;  %v145_v63 = vpop.xlane.xlu1 %144  ;;  %v269_v1 = vsub.f32 0.0, %v261_v60  ;;  %v379_v3 = vpop.eup %378 }
 0x145   :  { %380 = vlog2.f32 %v145_v63  ;;  %v167_v4 = vsub.f32 %v537_v28, %v157_v61  ;;  %v159_v12 = vmul.f32 0.6931472, %v379_v3 }
 0x146   :  { %v248_v7 = vsub.f32 2.0, %v240_v62  ;;  %v277_v8 = vmul.f32 %v269_v1, %v165_v0 }
 0x147   :  { %v279_v30 = vmul.f32 %v271_v5, %v167_v4  ;;  %v168_v15 = vsub.f32 %v529_v11, %v159_v12 }
 0x148   :  { %v256_v10 = vmul.f32 %v377_v50, %v248_v7  ;;  %288 = vadd.xlane.f32.xlu2 %v277_v8 }
 0x149   :  { %292 = vadd.xlane.f32.xlu1 %v279_v30 }
 0x14a   :  { %v264_v36 = vmul.f32 %v559_v39, %v256_v10 }
 0x14b   :  { %v381_v14 = vpop.eup %380 }
 0x14c   :  { %v161_v56 = vmul.f32 0.6931472, %v381_v14  ;;  %v272_v19 = vsub.f32 0.0, %v264_v36 }
 0x14e   :  { %v280_v20 = vmul.f32 %v272_v19, %v168_v15  ;;  %v169_v28 = vsub.f32 %v555_v37, %v161_v56 }
 0x150   :  { %294 = vadd.xlane.f32.xlu2 %v280_v20  ;;  %v281_v16 = vmul.f32 %v273_v21, %v169_v28 }
 0x152   :  { %296 = vadd.xlane.f32.xlu0 %v281_v16 }
 0x1ab   :  { %v285_v22 = vpop.xlane.xlu0 %284 }
 0x1ac   :  { %v287_v23 = vpop.xlane.xlu1 %286  ;;  %300 = vst.msk [vmem:[%s613_s3 + $0x8] sm:$0xff] %vm298_vm0, %v285_v22 }
 0x1ad   :  { %301 = vst.msk [vmem:[%s613_s3 + $0x10] sm:$0xff] %vm298_vm0, %v287_v23 }
 0x1b3   :  { %v291_v11 = vpop.xlane.xlu0 %290  ;;  %v283_v33 = vpop.xlane.xlu2 %282 }
 0x1b4   :  { %303 = vst.msk [vmem:[%s613_s3 + $0x20] sm:$0xff] %vm298_vm0, %v291_v11 }
 0x1b5   :  { %299 = vst.msk [vmem:[%s613_s3] sm:$0xff] %vm298_vm0, %v283_v33 }
 0x1bb   :  { %v289_v37 = vpop.xlane.xlu2 %288 }
 0x1bc   :  { %302 = vst.msk [vmem:[%s613_s3 + $0x18] sm:$0xff] %vm298_vm0, %v289_v37  ;;  %v293_v39 = vpop.xlane.xlu1 %292 }
 0x1bd   :  { %304 = vst.msk [vmem:[%s613_s3 + $0x28] sm:$0xff] %vm298_vm0, %v293_v39 }
 0x1c3   :  { %v295_v18 = vpop.xlane.xlu2 %294 }
 0x1c4   :  { %305 = vst.msk [vmem:[%s613_s3 + $0x30] sm:$0xff] %vm298_vm0, %v295_v18 }
 0x1c5   :  { %v297_v25 = vpop.xlane.xlu0 %296 }
 0x1c6   :  { %306 = vst.msk [vmem:[%s613_s3 + $0x38] sm:$0xff] %vm298_vm0, %v297_v25 }
 0x1c7   :  { %311 = vsyncpa [#allocation3], 1 }
 0x1c8   :  { %312 = vsyncpa [#allocation5], 1 }

</bundles_post_ra>
